<compile_context>
chip_gen: v7x
topology: tpu7x:2x2x1
jax: 0.10.0
libtpu: 0.0.40
codegen_flags: <defaults>
</compile_context>

<pallas_src>
import numpy as np
import jax
import jax.numpy as jnp
from jax.experimental import pallas as pl
from jax.experimental.pallas import tpu as pltpu

SE_SIZE = np.pi / 2.0
COEFF = 0.05
LEFT_CLAMP_OFFSET = 0.0
RIGHT_CLAMP_OFFSET = 0.0

LANES = 512          # lane-dense width (multiple of 128)
MAX_TILE_ROWS = 512  # 512 x 512 f32 = 1 MiB per block


def _round_up(a, b):
    return (a + b - 1) // b * b


def _csds_kernel(x_ref, o_ref):
    x = x_ref[...]
    half_se = jnp.float32(SE_SIZE / 2.0)
    lo = jnp.float32(-np.pi / 2.0 + LEFT_CLAMP_OFFSET)
    hi = jnp.float32(np.pi / 2.0 - SE_SIZE / 2.0 - RIGHT_CLAMP_OFFSET)

    # dilatedSin: shift, clamp, shift back, sin
    shifted = x - half_se
    shifted_clamped = jnp.clip(shifted, lo, hi)
    val = jnp.sin(shifted_clamped + half_se)

    # sloped part: coeff * relu(x)
    sloped = jnp.maximum(x, jnp.float32(0.0)) * jnp.float32(COEFF)

    o_ref[...] = (val + sloped).astype(o_ref.dtype)


def clamped_sloped_dilated_sin(x):
    """x: (N, C, H, W) float array. Returns same shape/dtype."""
    orig_shape = x.shape
    orig_dtype = x.dtype
    total = int(np.prod(orig_shape))

    # Lane-dense slab: flatten, pad to (rows_padded, LANES).
    rows = pl.cdiv(total, LANES)
    tile_r = min(MAX_TILE_ROWS, _round_up(rows, 8))   # sublane-aligned tile
    rows_padded = _round_up(rows, tile_r)
    padded_total = rows_padded * LANES

    x_flat = x.reshape(-1)
    if padded_total != total:
        x_flat = jnp.pad(x_flat, (0, padded_total - total))
    x2d = x_flat.reshape(rows_padded, LANES)

    grid = (rows_padded // tile_r,)

    out2d = pl.pallas_call(
        _csds_kernel,
        out_shape=jax.ShapeDtypeStruct((rows_padded, LANES), orig_dtype),
        grid=grid,
        in_specs=[pl.BlockSpec((tile_r, LANES), lambda i: (i, 0))],
        out_specs=pl.BlockSpec((tile_r, LANES), lambda i: (i, 0)),
        compiler_params=pltpu.CompilerParams(
            dimension_semantics=("parallel",)),
    )(x2d)

    out_flat = out2d.reshape(-1)
    if padded_total != total:
        out_flat = out_flat[:total]
    return out_flat.reshape(orig_shape)


def _reference(x):
    # Pure-JAX reference mirroring the PyTorch code exactly.
    se_size = SE_SIZE
    coeff = COEFF
    shifted = x + (-se_size / 2.0)
    clamped = jnp.clip(shifted,
                       -np.pi / 2.0 + LEFT_CLAMP_OFFSET,
                       np.pi / 2.0 - se_size / 2.0 - RIGHT_CLAMP_OFFSET)
    val = jnp.sin(clamped + se_size / 2.0)
    return val + jnp.maximum(x, 0.0) * coeff


if __name__ == "__main__":
    key = jax.random.PRNGKey(0)
    # NCHW input, small shapes: batch=2, channels=4, spatial=16x16.
    x = jax.random.normal(key, (2, 4, 16, 16), dtype=jnp.float32) * 2.0

    out = clamped_sloped_dilated_sin(x)
    out = jax.block_until_ready(out)

    ref = _reference(x)
    np.testing.assert_allclose(np.asarray(out), np.asarray(ref),
                               rtol=1e-6, atol=1e-6)
    print("KERNEL_OK")
</pallas_src>

<mosaic_0001>
module attributes {stable_mosaic.version = 11 : i64} {
  func.func @_csds_kernel(%arg0: i32, %arg1: memref<8x512xf32, #tpu.memory_space<vmem>>, %arg2: memref<8x512xf32, #tpu.memory_space<vmem>>) attributes {dimension_semantics = [#tpu.dimension_semantics<parallel>], iteration_bounds = array<i64: 1>, scalar_prefetch = 0 : i64, scratch_operands = 0 : i64, tpu.core_type = #tpu.core_type<tc>, window_params = [{transform_indices = @transform_0, window_bounds = array<i64: 8, 512>}, {transform_indices = @transform_1, window_bounds = array<i64: 8, 512>}]} {
    %c0 = arith.constant 0 : index
    %c0_0 = arith.constant 0 : index
    %0 = vector.load %arg1[%c0, %c0_0] : memref<8x512xf32, #tpu.memory_space<vmem>>, vector<8x512xf32>
    %cst = arith.constant 0.785398185 : f32
    %1 = vector.broadcast %cst : f32 to vector<8x512xf32>
    %2 = arith.subf %0, %1 : vector<8x512xf32>
    %cst_1 = arith.constant -1.57079637 : f32
    %cst_2 = arith.constant 0.785398185 : f32
    %3 = vector.broadcast %cst_1 : f32 to vector<8x512xf32>
    %4 = arith.maximumf %3, %2 : vector<8x512xf32>
    %5 = vector.broadcast %cst_2 : f32 to vector<8x512xf32>
    %6 = arith.minimumf %5, %4 : vector<8x512xf32>
    %cst_3 = arith.constant 0.785398185 : f32
    %7 = vector.broadcast %cst_3 : f32 to vector<8x512xf32>
    %8 = arith.addf %6, %7 : vector<8x512xf32>
    %9 = math.sin %8 : vector<8x512xf32>
    %cst_4 = arith.constant 0.000000e+00 : f32
    %10 = vector.broadcast %cst_4 : f32 to vector<8x512xf32>
    %11 = arith.maximumf %0, %10 : vector<8x512xf32>
    %cst_5 = arith.constant 5.000000e-02 : f32
    %12 = vector.broadcast %cst_5 : f32 to vector<8x512xf32>
    %13 = arith.mulf %11, %12 : vector<8x512xf32>
    %14 = arith.addf %9, %13 : vector<8x512xf32>
    %c0_6 = arith.constant 0 : index
    %c0_7 = arith.constant 0 : index
    %15 = vector.load %arg2[%c0_6, %c0_7] : memref<8x512xf32, #tpu.memory_space<vmem>>, vector<8x512xf32>
    tpu.vector_store %arg2[%c0_6, %c0_7], %14 {strides = array<i32>} : memref<8x512xf32, #tpu.memory_space<vmem>>, vector<8x512xf32>,
    return
  }
  func.func @transform_0(%arg0: i32) -> (i32, i32) {
    %c0_i32 = arith.constant 0 : i32
    %c0_i32_0 = arith.constant 0 : i32
    return %arg0, %c0_i32 : i32, i32
  }
  func.func @transform_1(%arg0: i32) -> (i32, i32) {
    %c0_i32 = arith.constant 0 : i32
    %c0_i32_0 = arith.constant 0 : i32
    return %arg0, %c0_i32 : i32, i32
  }
}

</mosaic_0001>

<bundles_post_ra>
// kernel: tpu_custom_call.1
= control target key start
LH: loop header
LB: loop body
LE: loop exit
PB: predicated region body
PF: predicated region fallthrough
CT: control target
= control target key end

     0   :  { %6 = vsyncpa [#allocation3], 0  ;;  %s961_s0 = inlined_call_operand.hbm [shape: f32[8,512], index: 0, kind: input, shape index: {}]   ;;  %s962_s1 = inlined_call_operand.hbm [shape: f32[8,512], index: 1, kind: output, shape index: {}]  }
   0x1   :  { %7 = vsyncpa [#allocation4], 0  ;;  %s596_s6 = smov [#allocation2]   ;;  %s548_s10 = scalar_lea.hbm %s961_s0, 512 }
   0x2   :  { %s14_s7 = sshll.u32 %s596_s6, 4  ;;  %p549_p0 = scmp.ne.s32.totalorder %s961_s0, %s548_s10  ;;  %s15_s7 = int_to_ptr.vmem [resolvable:$true] %s14_s7 }
   0x3   :  { %p552_p1 = scmp.lt.u32.totalorder %s548_s10, %s961_s0 }
   0x5   :  { %p554_p2 = pnand %p552_p1, %p549_p0 }
   0x7   :  { %557 = shalt.err (!%p554_p2)
}
   0x8   :  { %s558_s15 = scalar_lea.vmem %s15_s7, 512  ;;  %p563_p4 = scmp.lt.s32.totalorder %s15_s7, %s15_s7 }
   0x9   :  { %p559_p3 = scmp.ne.s32.totalorder %s15_s7, %s558_s15  ;;  %p564_p5 = scmp.lt.s32.totalorder %s558_s15, %s558_s15 }
   0xb   :  { %p565_p6 = por %p564_p5, %p563_p4 }
   0xd   :  { %p566_p7 = pnand %p565_p6, %p559_p3 }
   0xf   :  { %569 = shalt.err (!%p566_p7)
}
  0x10   :  { %17 = dma.hbm_to_vmem [thread:$0]  %s961_s0, 512, %s15_s7, [#allocation3]  }
  0x11   :  { %592 = dma.done.wait [#allocation3], 512  }
  0x12   :  { %593 = vsyncadd [#allocation3], 4294966784  ;;  %v626_v0 = vld [vmem:[#allocation2] sm:$0xff]  ;;  %v628_v1 = vld [vmem:[#allocation2 + $0x8] sm:$0xff]  ;;  %v597_v48 = vmov 683565275  }
  0x13   :  { %v630_v2 = vld [vmem:[#allocation2 + $0x10] sm:$0xff]  ;;  %v488_v3 = vadd.f32 -0.7853982, %v626_v0  ;;  %v489_v4 = vadd.f32 -0.7853982, %v628_v1  ;;  %v635_v6 = vld [vmem:[#allocation2 + $0x18] sm:$0xff] }
  0x14   :  { %v490_v5 = vadd.f32 -0.7853982, %v630_v2  ;;  %v491_v12 = vadd.f32 -0.7853982, %v635_v6  ;;  %v598_v50 = vmov 2475754826  }
  0x15   :  { %v29_v7 = vmax.f32 %v488_v3, -1.5707964  ;;  %v30_v8 = vmax.f32 %v489_v4, -1.5707964  ;;  %v599_v52 = vmov 2131351028  }
  0x16   :  { %v31_v9 = vmax.f32 %v490_v5, -1.5707964  ;;  %v32_v19 = vmax.f32 %v491_v12, -1.5707964  ;;  %v600_v54 = vmov 2102212464  }
  0x17   :  { %v33_v10 = vmin.f32 %v29_v7, 0.7853982  ;;  %v34_v11 = vmin.f32 %v30_v8, 0.7853982  ;;  %v601_v56 = vmov 920167782  }
  0x18   :  { %v35_v13 = vmin.f32 %v31_v9, 0.7853982  ;;  %v36_v28 = vmin.f32 %v32_v19, 0.7853982  ;;  %v602_v3 = vmov 1326507024  }
  0x19   :  { %v638_v14 = vadd.f32 0.7853982, %v33_v10  ;;  %v640_v15 = vadd.f32 0.7853982, %v34_v11  ;;  %s603_s0 = smov [#allocation5]  }
  0x1a   :  { %v642_v16 = vadd.f32 0.7853982, %v35_v13  ;;  %v654_v37 = vadd.f32 0.7853982, %v36_v28  ;;  %s479_s18 = sshll.u32 %s603_s0, 4  ;;  %s480_s18 = int_to_ptr.vmem [resolvable:$true] %s479_s18 }
  0x1b   :  { %v41_v17 = vand.u32 2147483647, %v638_v14  ;;  %v44_v18 = vand.u32 2139095040, %v638_v14  ;;  %v145_v20 = vand.u32 2147483647, %v640_v15  ;;  %v148_v21 = vand.u32 2139095040, %v640_v15  ;;  %p575_p9 = scmp.lt.s32.totalorder %s480_s18, %s480_s18 }
  0x1c   :  { %v252_v26 = vand.u32 2139095040, %v642_v16  ;;  %v249_v35 = vand.u32 2147483647, %v642_v16  ;;  %vm43_vm13 = vcmp.lt.s32.totalorder %v638_v14, 0  ;;  %s570_s19 = scalar_lea.vmem %s480_s18, 512 }
  0x1d   :  { %v45_v22 = vshrl.u32 %v44_v18, 23  ;;  %v48_v23 = vand.u32 8388607, %v41_v17  ;;  %v149_v24 = vshrl.u32 %v148_v21, 23  ;;  %v152_v25 = vand.u32 8388607, %v145_v20  ;;  %p571_p8 = scmp.ne.s32.totalorder %s480_s18, %s570_s19  ;;  %p576_p10 = scmp.lt.s32.totalorder %s570_s19, %s570_s19 }
  0x1e   :  { %v253_v30 = vshrl.u32 %v252_v26, 23  ;;  %v662_v45 = vand.u32 8388607, %v249_v35 }
  0x1f   :  { %v492_v27 = vadd.s32 4294967169, %v45_v22  ;;  %v496_v29 = vadd.s32 4294967169, %v149_v24  ;;  %v49_v31 = vor.u32 8388608, %v48_v23  ;;  %v153_v33 = vor.u32 8388608, %v152_v25  ;;  %p577_p11 = por %p576_p10, %p575_p9 }
  0x20   :  { %v500_v36 = vadd.s32 4294967169, %v253_v30 }
  0x21   :  { %v51_v32 = vadd.s32 1, %v492_v27  ;;  %v155_v34 = vadd.s32 1, %v496_v29  ;;  %v656_v41 = vshll.u32 %v49_v31, 8  ;;  %v658_v44 = vshll.u32 %v153_v33, 8  ;;  %p578_p12 = pnand %p577_p11, %p571_p8 }
  0x22   :  { %v664_v46 = vadd.s32 1, %v500_v36 }
  0x23   :  { %vm52_vm0 = vcmp.gt.s32.totalorder %v51_v32, 0  ;;  %vm156_vm1 = vcmp.gt.s32.totalorder %v155_v34, 0 }
  0x24   :  { %v53_v38 = vsel %vm52_vm0, %v51_v32, 0  ;;  %v157_v42 = vsel %vm156_vm1, %v155_v34, 0  ;;  %vm260_vm6 = vcmp.gt.s32.totalorder %v664_v46, 0 }
  0x25   :  { %v54_v39 = vshrl.u32 %v53_v38, 5  ;;  %v55_v40 = vand.u32 31, %v53_v38  ;;  %v159_v43 = vand.u32 31, %v157_v42  ;;  %v671_v58 = vshrl.u32 %v157_v42, 5 }
  0x27   :  { %v56_v47 = vsub.s32 32, %v55_v40  ;;  %v58_v49 = vshll.u32 %v597_v48, %v55_v40  ;;  %v61_v51 = vshll.u32 %v598_v50, %v55_v40  ;;  %v64_v53 = vshll.u32 %v599_v52, %v55_v40 }
  0x28   :  { %v67_v55 = vshll.u32 %v600_v54, %v55_v40  ;;  %v70_v57 = vshll.u32 %v601_v56, %v55_v40  ;;  %vm73_vm2 = vcmp.lt.s32.totalorder %v54_v39, 1  ;;  %vm74_vm3 = vcmp.lt.s32.totalorder %v54_v39, 2 }
  0x29   :  { %v57_v59 = vshrl.u32 %v597_v48, %v56_v47  ;;  %v59_v60 = vshrl.u32 %v598_v50, %v56_v47  ;;  %v62_v61 = vshrl.u32 %v599_v52, %v56_v47  ;;  %v65_v62 = vshrl.u32 %v600_v54, %v56_v47 }
  0x2a   :  { %v68_v63 = vshrl.u32 %v601_v56, %v56_v47  ;;  %v71_v4 = vshrl.u32 %v602_v3, %v56_v47  ;;  %vm76_vm4 = vcmp.lt.s32.totalorder %v54_v39, 4  ;;  %v160_v9 = vsub.s32 32, %v159_v43 }
  0x2b   :  { %v60_v5 = vor.u32 %v59_v60, %v58_v49  ;;  %v63_v7 = vor.u32 %v62_v61, %v61_v51  ;;  %v66_v8 = vor.u32 %v65_v62, %v64_v53  ;;  %vm75_vm5 = vcmp.lt.s32.totalorder %v54_v39, 3 }
  0x2c   :  { %v69_v10 = vor.u32 %v68_v63, %v67_v55  ;;  %v72_v11 = vor.u32 %v71_v4, %v70_v57  ;;  %v162_v12 = vshll.u32 %v597_v48, %v159_v43  ;;  %v165_v25 = vshll.u32 %v598_v50, %v159_v43 }
  0x2d   :  { %v77_v13 = vsel %vm73_vm2, %v57_v59, %v60_v5  ;;  %v78_v18 = vsel %vm76_vm4, %v66_v8, 2102212464  ;;  %v81_v19 = vsel %vm73_vm2, %v60_v5, %v63_v7  ;;  %v85_v21 = vsel %vm73_vm2, %v63_v7, %v66_v8 }
  0x2e   :  { %v79_v22 = vsel %vm75_vm5, %v63_v7, %v78_v18  ;;  %v82_v23 = vsel %vm76_vm4, %v69_v10, 920167782  ;;  %v86_v24 = vsel %vm76_vm4, %v72_v11, 1326507024  ;;  %v161_v28 = vshrl.u32 %v597_v48, %v160_v9 }
  0x2f   :  { %v83_v26 = vsel %vm75_vm5, %v66_v8, %v82_v23  ;;  %v87_v27 = vsel %vm75_vm5, %v69_v10, %v86_v24  ;;  %v163_v29 = vshrl.u32 %v598_v50, %v160_v9  ;;  %v80_v30 = vsel %vm74_vm3, %v77_v13, %v79_v22 }
  0x30   :  { %v84_v31 = vsel %vm74_vm3, %v81_v19, %v83_v26  ;;  %v88_v32 = vsel %vm74_vm3, %v85_v21, %v87_v27  ;;  %v166_v33 = vshrl.u32 %v599_v52, %v160_v9  ;;  %v168_v49 = vshll.u32 %v599_v52, %v159_v43 }
  0x31   :  { %v692_v34 = vmul.u32.u64.low %v656_v41, %v88_v32  ;;  %v693_v36 = vmul.u32.u64.high %v656_v41, %v88_v32, %v692_v34  ;;  %v696_v38 = vmul.u32.u64.low %v656_v41, %v84_v31  ;;  %v697_v40 = vmul.u32.u64.high %v656_v41, %v84_v31, %v696_v38 }
  0x32   :  { %v164_v42 = vor.u32 %v163_v29, %v162_v12  ;;  %v167_v47 = vor.u32 %v166_v33, %v165_v25  ;;  %v169_v51 = vshrl.u32 %v600_v54, %v160_v9  ;;  %v171_v39 = vshll.u32 %v600_v54, %v159_v43 }
  0x33   :  { %v172_v53 = vshrl.u32 %v601_v56, %v160_v9  ;;  %v174_v55 = vshll.u32 %v601_v56, %v159_v43  ;;  %v175_v57 = vshrl.u32 %v602_v3, %v160_v9  ;;  %v96_v59 = vmul.u32 %v656_v41, %v80_v30 }
  0x34   :  { %v170_v60 = vor.u32 %v169_v51, %v168_v49  ;;  %vm177_vm7 = vcmp.lt.s32.totalorder %v671_v58, 1  ;;  %vm178_vm8 = vcmp.lt.s32.totalorder %v671_v58, 2  ;;  %vm98_vm9 = vc.u32 %v693_v36, %v696_v38 }
  0x35   :  { %v99_v61 = vadd.s32 1, %v697_v40  ;;  %v173_v62 = vor.u32 %v172_v53, %v171_v39  ;;  %vm179_vm10 = vcmp.lt.s32.totalorder %v671_v58, 3  ;;  %v176_v63 = vor.u32 %v175_v57, %v174_v55 }
  0x36   :  { %vm180_vm11 = vcmp.lt.s32.totalorder %v671_v58, 4  ;;  %v181_v43 = vsel %vm177_vm7, %v161_v28, %v164_v42  ;;  %v185_v4 = vsel %vm177_vm7, %v164_v42, %v167_v47  ;;  %v189_v8 = vsel %vm177_vm7, %v167_v47, %v170_v60 }
  0x37   :  { %v100_v41 = vsel %vm98_vm9, %v99_v61, %v697_v40  ;;  %v182_v5 = vsel %vm180_vm11, %v170_v60, 2102212464  ;;  %v186_v7 = vsel %vm180_vm11, %v173_v62, 920167782  ;;  %v190_v12 = vsel %vm180_vm11, %v176_v63, 1326507024 }
  0x38   :  { %v101_v9 = vadd.s32 %v100_v41, %v96_v59  ;;  %v183_v10 = vsel %vm179_vm10, %v167_v47, %v182_v5  ;;  %v187_v11 = vsel %vm179_vm10, %v170_v60, %v186_v7  ;;  %v191_v19 = vsel %vm179_vm10, %v173_v62, %v190_v12 }
  0x39   :  { %v184_v13 = vsel %vm178_vm8, %v181_v43, %v183_v10  ;;  %v188_v18 = vsel %vm178_vm8, %v185_v4, %v187_v11  ;;  %v261_v21 = vsel %vm260_vm6, %v664_v46, 0  ;;  %v192_v23 = vsel %vm178_vm8, %v189_v8, %v191_v19 }
  0x3a   :  { %v102_v22 = vadd.s32 536870912, %v101_v9  ;;  %v725_v24 = vmul.u32.u64.low %v658_v44, %v188_v18  ;;  %v726_v25 = vmul.u32.u64.high %v658_v44, %v188_v18, %v725_v24  ;;  %v353_v28 = vand.u32 2147483647, %v654_v37 }
  0x3b   :  { %v730_v26 = vmul.u32.u64.low %v658_v44, %v192_v23  ;;  %v731_v27 = vmul.u32.u64.high %v658_v44, %v192_v23, %v730_v26  ;;  %v257_v30 = vor.u32 8388608, %v662_v45  ;;  %v263_v31 = vand.u32 31, %v261_v21 }
  0x3c   :  { %v103_v29 = vshrl.u32 %v102_v22, 30  ;;  %v200_v46 = vmul.u32 %v658_v44, %v184_v13  ;;  %v203_v58 = vadd.s32 1, %v726_v25  ;;  %v356_v34 = vand.u32 2139095040, %v654_v37 }
  0x3d   :  { %v264_v33 = vsub.s32 32, %v263_v31  ;;  %vm202_vm12 = vc.u32 %v731_v27, %v725_v24  ;;  %v742_v40 = vand.u32 8388607, %v353_v28  ;;  %v748_v44 = vshrl.u32 %v261_v21, 5 }
  0x3e   :  { %v104_v32 = vshll.u32 %v103_v29, 30  ;;  %v204_v45 = vsel %vm202_vm12, %v203_v58, %v726_v25  ;;  %v750_v47 = vshll.u32 %v257_v30, 8  ;;  %v266_v51 = vshll.u32 %v597_v48, %v263_v31 }
  0x3f   :  { %v205_v49 = vadd.s32 %v204_v45, %v200_v46  ;;  %v267_v39 = vshrl.u32 %v598_v50, %v264_v33  ;;  %v269_v53 = vshll.u32 %v598_v50, %v263_v31  ;;  %v270_v57 = vshrl.u32 %v599_v52, %v264_v33 }
  0x40   :  { %v745_v42 = vsub.s32 %v101_v9, %v104_v32  ;;  %v272_v59 = vshll.u32 %v599_v52, %v263_v31  ;;  %v273_v60 = vshrl.u32 %v600_v54, %v264_v33  ;;  %v97_v61 = vadd.s32 %v696_v38, %v693_v36 }
  0x41   :  { %v206_v62 = vadd.s32 536870912, %v205_v49  ;;  %v275_v63 = vshll.u32 %v600_v54, %v263_v31  ;;  %v357_v43 = vshrl.u32 %v356_v34, 23  ;;  %v127_v41 = vsub.s32 4, %v103_v29 }
  0x42   :  { %v107_v55 = vsub.s32 0, %v745_v42  ;;  %v276_v5 = vshrl.u32 %v601_v56, %v264_v33  ;;  %vm284_vm14 = vcmp.lt.s32.totalorder %v748_v44, 4  ;;  %v265_v8 = vshrl.u32 %v597_v48, %v264_v33 }
  0x43   :  { %v765_v7 = vshrl.u32 %v206_v62, 30  ;;  %v278_v9 = vshll.u32 %v601_v56, %v263_v31  ;;  %v279_v10 = vshrl.u32 %v602_v3, %v264_v33  ;;  %v268_v38 = vor.u32 %v267_v39, %v266_v51 }
  0x44   :  { %v493_v4 = vmin.u32 %v107_v55, %v745_v42  ;;  %v271_v11 = vor.u32 %v270_v57, %v269_v53  ;;  %v274_v12 = vor.u32 %v273_v60, %v272_v59  ;;  %v277_v18 = vor.u32 %v276_v5, %v275_v63 }
  0x45   :  { %v208_v13 = vshll.u32 %v765_v7, 30  ;;  %vm281_vm15 = vcmp.lt.s32.totalorder %v748_v44, 1  ;;  %vm283_vm0 = vcmp.lt.s32.totalorder %v748_v44, 3  ;;  %v280_v21 = vor.u32 %v279_v10, %v278_v9 }
  0x46   :  { %v109_v36 = vclz %v493_v4  ;;  %v286_v22 = vsel %vm284_vm14, %v274_v12, 2102212464  ;;  %v504_v23 = vadd.s32 4294967169, %v357_v43  ;;  %v128_v25 = vsel %vm43_vm13, %v127_v41, %v103_v29 }
  0x47   :  { %v777_v26 = vsub.s32 %v205_v49, %v208_v13  ;;  %vm282_vm1 = vcmp.lt.s32.totalorder %v748_v44, 2  ;;  %v290_v30 = vsel %vm284_vm14, %v277_v18, 920167782  ;;  %v285_v31 = vsel %vm281_vm15, %v265_v8, %v268_v38 }
  0x48   :  { %v494_v19 = vadd.s32 4294967294, %v109_v36  ;;  %v289_v46 = vsel %vm281_vm15, %v268_v38, %v271_v11  ;;  %v291_v32 = vsel %vm283_vm0, %v274_v12, %v290_v30  ;;  %v287_v33 = vsel %vm283_vm0, %v271_v11, %v286_v22 }
  0x49   :  { %v211_v29 = vsub.s32 0, %v777_v26  ;;  %v293_v34 = vsel %vm281_vm15, %v271_v11, %v274_v12  ;;  %v294_v39 = vsel %vm284_vm14, %v280_v21, 1326507024  ;;  %vm798_vm3 = vcmp.le.f32.partialorder %v41_v17, 0.7853982 }
  0x4a   :  { %vm495_vm2 = vcmp.lt.s32.totalorder %v494_v19, 0  ;;  %vm147_vm4 = vcmp.lt.s32.totalorder %v640_v15, 0  ;;  %v292_v57 = vsel %vm282_vm1, %v289_v46, %v291_v32  ;;  %v363_v63 = vadd.s32 1, %v504_v23 }
  0x4b   :  { %v112_v58 = vsel %vm495_vm2, 0, %v494_v19  ;;  %v497_v55 = vmin.u32 %v211_v29, %v777_v26  ;;  %v130_v17 = vsel %vm798_vm3, 0, %v128_v25  ;;  %v288_v4 = vsel %vm282_vm1, %v285_v31, %v287_v33 }
  0x4c   :  { %v113_v45 = vsub.s32 32, %v112_v58  ;;  %v114_v49 = vshll.u32 %v745_v42, %v112_v58  ;;  %v117_v51 = vsub.s32 4294967266, %v112_v58  ;;  %v295_v42 = vsel %vm283_vm0, %v277_v18, %v294_v39 }
  0x4d   :  { %v296_v62 = vsel %vm282_vm1, %v293_v34, %v295_v42  ;;  %v213_v43 = vclz %v497_v55  ;;  %v361_v41 = vor.u32 8388608, %v742_v40  ;;  %vm364_vm5 = vcmp.gt.s32.totalorder %v363_v63, 0 }
  0x4e   :  { %v115_v59 = vshrl.u32 %v97_v61, %v113_v45  ;;  %v118_v60 = vadd.s32 127, %v117_v51  ;;  %v816_v9 = vmul.u32.u64.low %v750_v47, %v296_v62  ;;  %v817_v10 = vmul.u32.u64.high %v750_v47, %v296_v62, %v816_v9 }
  0x4f   :  { %v498_v61 = vadd.s32 4294967294, %v213_v43  ;;  %v820_v36 = vmul.u32.u64.low %v750_v47, %v292_v57  ;;  %v821_v38 = vmul.u32.u64.high %v750_v47, %v292_v57, %v820_v36  ;;  %v231_v44 = vsub.s32 4, %v765_v7 }
  0x50   :  { %v116_v5 = vor.u32 %v115_v59, %v114_v49  ;;  %v119_v8 = vshll.u32 %v118_v60, 23  ;;  %v365_v13 = vsel %vm364_vm5, %v363_v63, 0  ;;  %v825_v18 = vadd.s32 3, %v130_v17 }
  0x51   :  { %v201_v19 = vadd.s32 %v725_v24, %v731_v27  ;;  %vm499_vm6 = vcmp.lt.s32.totalorder %v498_v61, 0  ;;  %v367_v21 = vand.u32 31, %v365_v13  ;;  %v304_v25 = vmul.u32 %v750_v47, %v288_v4 }
  0x52   :  { %v120_v11 = vor.u32 4788187, %v119_v8  ;;  %v123_v12 = vcvt.s32.f32 %v116_v5  ;;  %v216_v23 = vsel %vm499_vm6, 0, %v498_v61  ;;  %vm306_vm7 = vc.u32 %v817_v10, %v820_v36 }
  0x53   :  { %vm834_vm8 = vcmp.le.f32.partialorder %v145_v20, 0.7853982  ;;  %v217_v31 = vsub.s32 32, %v216_v23  ;;  %v218_v46 = vshll.u32 %v777_v26, %v216_v23  ;;  %v221_v32 = vsub.s32 4294967266, %v216_v23 }
  0x54   :  { %v121_v22 = vand.u32 2147483647, %v120_v11  ;;  %v307_v24 = vadd.s32 1, %v821_v38  ;;  %v232_v47 = vsel %vm147_vm4, %v231_v44, %v765_v7  ;;  %v843_v58 = vshrl.u32 %v365_v13, 5 }
  0x55   :  { %v368_v29 = vsub.s32 32, %v367_v21  ;;  %v219_v33 = vshrl.u32 %v201_v19, %v217_v31  ;;  %v222_v34 = vadd.s32 127, %v221_v32  ;;  %v370_v45 = vshll.u32 %v597_v48, %v367_v21 }
  0x56   :  { %v124_v27 = vmul.f32 %v123_v12, %v121_v22  ;;  %v308_v20 = vsel %vm306_vm7, %v307_v24, %v821_v38  ;;  %v373_v39 = vshll.u32 %v598_v50, %v367_v21  ;;  %v376_v7 = vshll.u32 %v599_v52, %v367_v21 }
  0x57   :  { %v309_v51 = vadd.s32 %v308_v20, %v304_v25  ;;  %v371_v26 = vshrl.u32 %v598_v50, %v368_v29  ;;  %v220_v55 = vor.u32 %v219_v33, %v218_v46  ;;  %v223_v57 = vshll.u32 %v222_v34, 23 }
  0x58   :  { %v125_v49 = vxor.u32 2147483648, %v124_v27  ;;  %v374_v42 = vshrl.u32 %v599_v52, %v368_v29  ;;  %v377_v62 = vshrl.u32 %v600_v54, %v368_v29  ;;  %v379_v63 = vshll.u32 %v600_v54, %v367_v21 }
  0x59   :  { %v310_v60 = vadd.s32 536870912, %v309_v51  ;;  %v224_v43 = vor.u32 4788187, %v223_v57  ;;  %v227_v50 = vcvt.s32.f32 %v220_v55  ;;  %v372_v4 = vor.u32 %v371_v26, %v370_v45 }
  0x5a   :  { %v126_v59 = vsel %vm43_vm13, %v125_v49, %v124_v27  ;;  %v375_v8 = vor.u32 %v374_v42, %v373_v39  ;;  %v380_v52 = vshrl.u32 %v601_v56, %v368_v29  ;;  %v382_v61 = vshll.u32 %v601_v56, %v367_v21 }
  0x5b   :  { %v129_v17 = vsel %vm798_vm3, %v638_v14, %v126_v59  ;;  %v858_v5 = vshrl.u32 %v310_v60, 30  ;;  %v225_v9 = vand.u32 2147483647, %v224_v43  ;;  %v383_v38 = vshrl.u32 %v602_v3, %v368_v29 }
  0x5c   :  { %532 = vcosq.f32 %v129_v17  ;;  %v234_v54 = vsel %vm834_vm8, 0, %v232_v47  ;;  %v381_v11 = vor.u32 %v380_v52, %v379_v63  ;;  %vm385_vm9 = vcmp.lt.s32.totalorder %v843_v58, 1 }
  0x5d   :  { %534 = vsinq.f32 %v129_v17  ;;  %v312_v53 = vshll.u32 %v858_v5, 30  ;;  %v228_v12 = vmul.f32 %v227_v50, %v225_v9  ;;  %v369_v44 = vshrl.u32 %v597_v48, %v368_v29 }
  0x5e   :  { %v378_v13 = vor.u32 %v377_v62, %v376_v7  ;;  %v870_v19 = vshll.u32 %v361_v41, 8  ;;  %v384_v56 = vor.u32 %v383_v38, %v382_v61  ;;  %vm387_vm10 = vcmp.lt.s32.totalorder %v843_v58, 3 }
  0x5f   :  { %v872_v22 = vsub.s32 %v309_v51, %v312_v53  ;;  %vm388_vm11 = vcmp.lt.s32.totalorder %v843_v58, 4  ;;  %vm133_vm12 = vweird.f32 %v638_v14  ;;  %v229_v3 = vxor.u32 2147483648, %v228_v12 }
  0x60   :  { %vm386_vm13 = vcmp.lt.s32.totalorder %v843_v58, 2  ;;  %v390_v48 = vsel %vm388_vm11, %v378_v13, 2102212464  ;;  %v393_v40 = vsel %vm385_vm9, %v372_v4, %v375_v8  ;;  %v135_v41 = vand.u32 3, %v825_v18 }
  0x61   :  { %v238_v21 = vadd.s32 3, %v234_v54  ;;  %v315_v23 = vsub.s32 0, %v872_v22  ;;  %v394_v25 = vsel %vm388_vm11, %v381_v11, 920167782  ;;  %v230_v31 = vsel %vm147_vm4, %v229_v3, %v228_v12 }
  0x62   :  { %v389_v46 = vsel %vm385_vm9, %v369_v44, %v372_v4  ;;  %v391_v32 = vsel %vm387_vm10, %v375_v8, %v390_v48  ;;  %v395_v24 = vsel %vm387_vm10, %v378_v13, %v394_v25  ;;  %v233_v18 = vsel %vm834_vm8, %v640_v15, %v230_v31 }
  0x63   :  { %v501_v27 = vmin.u32 %v315_v23, %v872_v22  ;;  %v396_v47 = vsel %vm386_vm13, %v393_v40, %v395_v24  ;;  %v397_v29 = vsel %vm385_vm9, %v375_v8, %v378_v13  ;;  %536 = vcosq.f32 %v233_v18 }
  0x64   :  { %v398_v33 = vsel %vm388_vm11, %v384_v56, 1326507024  ;;  %v905_v34 = vmul.u32.u64.low %v870_v19, %v396_v47  ;;  %v906_v20 = vmul.u32.u64.high %v870_v19, %v396_v47, %v905_v34  ;;  %vm136_vm14 = vcmp.lt.s32.totalorder %v135_v41, 2 }
  0x65   :  { %vm140_vm15 = vcmp.eq.s32.totalorder %v135_v41, 2  ;;  %538 = vsinq.f32 %v233_v18  ;;  %v317_v30 = vclz %v501_v27  ;;  %vm137_vm0 = vcmp.eq.s32.totalorder %v135_v41, 0 }
  0x66   :  { %v533_v45 = vpop.eup %532  ;;  %v392_v26 = vsel %vm386_vm13, %v389_v46, %v391_v32  ;;  %v399_v39 = vsel %vm387_vm10, %v381_v11, %v398_v33  ;;  %v457_v7 = vmax.f32 %v626_v0, 0.0  ;;  %v239_v60 = vand.u32 3, %v238_v21 }
  0x67   :  { %v535_v49 = vpop.eup %534  ;;  %v141_v51 = vxor.u32 2147483648, %v533_v45  ;;  %v502_v57 = vadd.s32 4294967294, %v317_v30  ;;  %v400_v42 = vsel %vm386_vm13, %v397_v29, %v399_v39  ;;  %v305_v43 = vadd.s32 %v820_v36, %v817_v10 }
  0x68   :  { %v138_v55 = vxor.u32 2147483648, %v535_v49  ;;  %v917_v62 = vmul.u32.u64.low %v870_v19, %v400_v42  ;;  %v918_v63 = vmul.u32.u64.high %v870_v19, %v400_v42, %v917_v62  ;;  %v411_v50 = vadd.s32 1, %v906_v20 }
  0x69   :  { %v142_v59 = vsel %vm140_vm15, %v141_v51, %v535_v49  ;;  %vm503_vm1 = vcmp.lt.s32.totalorder %v502_v57, 0  ;;  %v408_v58 = vmul.u32 %v870_v19, %v392_v26  ;;  %v461_v52 = vmul.f32 0.05, %v457_v7 }
  0x6a   :  { %v139_v17 = vsel %vm137_vm0, %v533_v45, %v138_v55  ;;  %v320_v8 = vsel %vm503_vm1, 0, %v502_v57  ;;  %vm410_vm2 = vc.u32 %v918_v63, %v905_v34  ;;  %v458_v53 = vmax.f32 %v628_v1, 0.0 }
  0x6b   :  { %v143_v4 = vsel %vm136_vm14, %v139_v17, %v142_v59  ;;  %v321_v9 = vsub.s32 32, %v320_v8  ;;  %v322_v61 = vshll.u32 %v872_v22, %v320_v8  ;;  %v325_v38 = vsub.s32 4294967266, %v320_v8 }
  0x6c   :  { %v144_v0 = vsel %vm133_vm12, nan, %v143_v4  ;;  %v412_v54 = vsel %vm410_vm2, %v411_v50, %v906_v20  ;;  %vm244_vm3 = vcmp.eq.s32.totalorder %v239_v60, 2  ;;  %vm241_vm4 = vcmp.eq.s32.totalorder %v239_v60, 0 }
  0x6d   :  { %v323_v10 = vshrl.u32 %v305_v43, %v321_v9  ;;  %v326_v36 = vadd.s32 127, %v325_v38  ;;  %v537_v11 = vpop.eup %536  ;;  %v413_v12 = vadd.s32 %v412_v54, %v408_v58  ;;  %v465_v44 = vadd.f32 %v461_v52, %v144_v0 }
  0x6e   :  { %v245_v14 = vxor.u32 2147483648, %v537_v11  ;;  %vm237_vm5 = vweird.f32 %v640_v15  ;;  %vm240_vm6 = vcmp.lt.s32.totalorder %v239_v60, 2  ;;  %v462_v21 = vmul.f32 0.05, %v458_v53 }
  0x6f   :  { %v539_v13 = vpop.eup %538  ;;  %v324_v19 = vor.u32 %v323_v10, %v322_v61  ;;  %v327_v56 = vshll.u32 %v326_v36, 23  ;;  %v414_v3 = vadd.s32 536870912, %v413_v12  ;;  %469 = vst [vmem:[#allocation5] sm:$0xff] %v465_v44  ;;  %v335_v46 = vsub.s32 4, %v858_v5 }
  0x70   :  { %v242_v22 = vxor.u32 2147483648, %v539_v13  ;;  %v246_v48 = vsel %vm244_vm3, %v245_v14, %v539_v13  ;;  %vm251_vm7 = vcmp.lt.s32.totalorder %v642_v16, 0  ;;  %vm250_vm8 = vcmp.le.f32.partialorder %v249_v35, 0.7853982 }
  0x71   :  { %v328_v40 = vor.u32 4788187, %v327_v56  ;;  %v331_v41 = vcvt.s32.f32 %v324_v19  ;;  %v415_v23 = vshrl.u32 %v414_v3, 30  ;;  %v336_v29 = vsel %vm251_vm7, %v335_v46, %v858_v5 }
  0x72   :  { %v243_v1 = vsel %vm241_vm4, %v537_v11, %v242_v22  ;;  %v338_v30 = vsel %vm250_vm8, 0, %v336_v29  ;;  %v409_v55 = vadd.s32 %v905_v34, %v918_v63  ;;  %v459_v62 = vmax.f32 %v630_v2, 0.0 }
  0x73   :  { %v247_v25 = vsel %vm240_vm6, %v243_v1, %v246_v48  ;;  %v329_v31 = vand.u32 2147483647, %v328_v40  ;;  %v416_v24 = vshll.u32 %v415_v23, 30  ;;  %v342_v26 = vadd.s32 3, %v338_v30 }
  0x74   :  { %v248_v32 = vsel %vm237_vm5, nan, %v247_v25  ;;  %vm341_vm12 = vweird.f32 %v642_v16  ;;  %v463_v0 = vmul.f32 0.05, %v459_v62  ;;  %v439_v10 = vsub.s32 4, %v415_v23 }
  0x75   :  { %v332_v18 = vmul.f32 %v331_v41, %v329_v31  ;;  %v466_v27 = vadd.f32 %v462_v21, %v248_v32  ;;  %v417_v15 = vsub.s32 %v413_v12, %v416_v24  ;;  %v343_v35 = vand.u32 3, %v342_v26 }
  0x76   :  { %vm355_vm14 = vcmp.lt.s32.totalorder %v654_v37, 0  ;;  %vm354_vm15 = vcmp.le.f32.partialorder %v353_v28, 0.7853982  ;;  %v460_v19 = vmax.f32 %v635_v6, 0.0  ;;  %vm445_vm3 = vweird.f32 %v654_v37 }
  0x77   :  { %v333_v47 = vxor.u32 2147483648, %v332_v18  ;;  %470 = vst [vmem:[#allocation5 + $0x8] sm:$0xff] %v466_v27  ;;  %v419_v33 = vsub.s32 0, %v417_v15  ;;  %vm348_vm10 = vcmp.eq.s32.totalorder %v343_v35, 2  ;;  %vm345_vm11 = vcmp.eq.s32.totalorder %v343_v35, 0 }
  0x78   :  { %vm344_vm13 = vcmp.lt.s32.totalorder %v343_v35, 2  ;;  %v464_v40 = vmul.f32 0.05, %v460_v19 }
  0x79   :  { %v334_v20 = vsel %vm251_vm7, %v333_v47, %v332_v18  ;;  %v505_v49 = vmin.u32 %v419_v33, %v417_v15 }
  0x7a   :  { %v337_v45 = vsel %vm250_vm8, %v642_v16, %v334_v20  ;;  %v440_v16 = vsel %vm355_vm14, %v439_v10, %v415_v23 }
  0x7b   :  { %540 = vcosq.f32 %v337_v45  ;;  %v421_v51 = vclz %v505_v49  ;;  %v442_v44 = vsel %vm354_vm15, 0, %v440_v16 }
  0x7c   :  { %542 = vsinq.f32 %v337_v45  ;;  %v446_v13 = vadd.s32 3, %v442_v44 }
  0x7d   :  { %v506_v39 = vadd.s32 4294967294, %v421_v51 }
  0x7e   :  { %v447_v14 = vand.u32 3, %v446_v13 }
  0x7f   :  { %vm507_vm9 = vcmp.lt.s32.totalorder %v506_v39, 0 }
  0x80   :  { %v424_v57 = vsel %vm507_vm9, 0, %v506_v39  ;;  %vm452_vm0 = vcmp.eq.s32.totalorder %v447_v14, 2  ;;  %vm449_vm1 = vcmp.eq.s32.totalorder %v447_v14, 0  ;;  %vm448_vm2 = vcmp.lt.s32.totalorder %v447_v14, 2 }
  0x81   :  { %v425_v42 = vsub.s32 32, %v424_v57  ;;  %v426_v5 = vshll.u32 %v417_v15, %v424_v57  ;;  %v429_v7 = vsub.s32 4294967266, %v424_v57 }
  0x83   :  { %v427_v59 = vshrl.u32 %v409_v55, %v425_v42  ;;  %v430_v60 = vadd.s32 127, %v429_v7 }
  0x85   :  { %v541_v17 = vpop.eup %540  ;;  %v428_v4 = vor.u32 %v427_v59, %v426_v5  ;;  %v431_v8 = vshll.u32 %v430_v60, 23 }
  0x86   :  { %v543_v43 = vpop.eup %542  ;;  %v349_v50 = vxor.u32 2147483648, %v541_v17 }
  0x87   :  { %v346_v34 = vxor.u32 2147483648, %v543_v43  ;;  %v432_v58 = vor.u32 4788187, %v431_v8  ;;  %v435_v52 = vcvt.s32.f32 %v428_v4 }
  0x88   :  { %v350_v63 = vsel %vm348_vm10, %v349_v50, %v543_v43 }
  0x89   :  { %v347_v9 = vsel %vm345_vm11, %v541_v17, %v346_v34  ;;  %v433_v38 = vand.u32 2147483647, %v432_v58 }
  0x8a   :  { %v351_v61 = vsel %vm344_vm13, %v347_v9, %v350_v63 }
  0x8b   :  { %v352_v2 = vsel %vm341_vm12, nan, %v351_v61  ;;  %v436_v36 = vmul.f32 %v435_v52, %v433_v38 }
  0x8c   :  { %v467_v54 = vadd.f32 %v463_v0, %v352_v2 }
  0x8d   :  { %v437_v53 = vxor.u32 2147483648, %v436_v36 }
  0x8e   :  { %471 = vst [vmem:[#allocation5 + $0x10] sm:$0xff] %v467_v54 }
  0x8f   :  { %v438_v11 = vsel %vm355_vm14, %v437_v53, %v436_v36 }
  0x90   :  { %v441_v12 = vsel %vm354_vm15, %v654_v37, %v438_v11 }
  0x91   :  { %544 = vcosq.f32 %v441_v12 }
  0x92   :  { %546 = vsinq.f32 %v441_v12 }
  0x9b   :  { %v545_v56 = vpop.eup %544 }
  0x9c   :  { %v547_v22 = vpop.eup %546  ;;  %v453_v3 = vxor.u32 2147483648, %v545_v56 }
  0x9d   :  { %v450_v28 = vxor.u32 2147483648, %v547_v22 }
  0x9e   :  { %v454_v48 = vsel %vm452_vm0, %v453_v3, %v547_v22 }
  0x9f   :  { %v451_v41 = vsel %vm449_vm1, %v545_v56, %v450_v28 }
  0xa0   :  { %v455_v21 = vsel %vm448_vm2, %v451_v41, %v454_v48 }
  0xa1   :  { %v456_v1 = vsel %vm445_vm3, nan, %v455_v21 }
  0xa2   :  { %v468_v23 = vadd.f32 %v464_v40, %v456_v1 }
  0xa4   :  { %472 = vst [vmem:[#allocation5 + $0x18] sm:$0xff] %v468_v23 }
  0xa5   :  { %581 = shalt.err (!%p578_p12)
}
  0xa6   :  { %s582_s22 = scalar_lea.hbm %s962_s1, 512 }
  0xa7   :  { %p583_p13 = scmp.ne.s32.totalorder %s962_s1, %s582_s22  ;;  %p586_p0 = scmp.lt.u32.totalorder %s582_s22, %s962_s1 }
  0xa9   :  { %p588_p1 = pnand %p586_p0, %p583_p13 }
  0xab   :  { %591 = shalt.err (!%p588_p1)
}
  0xac   :  { %482 = dma.vmem_to_hbm [thread:$0]  %s480_s18, 512, %s962_s1, [#allocation4]  }
  0xad   :  { %594 = dma.done.wait [#allocation4], 512  }
  0xae   :  { %595 = vsyncadd [#allocation4], 4294966784 }
  0xaf   :  { %486 = vsyncpa [#allocation3], 1 }
  0xb0   :  { %487 = vsyncpa [#allocation4], 1 }

</bundles_post_ra>
